<compile_context>
chip_gen: v7x
topology: tpu7x:2x2x1
jax: 0.10.0
libtpu: 0.0.40
codegen_flags: <defaults>
</compile_context>

<pallas_src>
import functools

import jax
import jax.numpy as jnp
from jax.experimental import pallas as pl
from jax.experimental.pallas import tpu as pltpu

GAMMA = 1.5
ALPHA = 0.6

_SUB = 8      # sublane tile
_LANE = 128   # lane tile


def _round_up(a, b):
    return ((a + b - 1) // b) * b


def _choose_layout(shape, lane_cols):
    """Pick a (rows, cols) view reachable by a FREE reshape (no pad copy)."""
    total = 1
    for s in shape:
        total *= int(s)
    if total % lane_cols == 0:
        return total // lane_cols, lane_cols          # widest lane-dense slab
    if total % _LANE == 0:
        return total // _LANE, _LANE                  # still lane-dense
    if len(shape) >= 2:
        cols = int(shape[-1])
        return total // cols, cols                    # natural 2-D shape
    return 1, total                                   # 1-D ragged


def _focal_bce_kernel(x_ref, t_ref, out_ref, acc_ref, *,
                      block_rows, cols, steps, rows,
                      gamma, alpha, binary_targets, approx_reciprocal):
    c = pl.program_id(0)
    i = pl.program_id(1)

    @pl.when(i == 0)
    def _():
        acc_ref[...] = jnp.zeros_like(acc_ref)

    # Rows of the logical (rows, cols) array still covered by this block.
    block_start = (c * steps + i) * block_rows
    remaining = rows - block_start

    x = x_ref[...].astype(jnp.float32)
    t = t_ref[...].astype(jnp.float32)

    # Numerically stable BCE-with-logits:
    #   bce = relu(x) - x*t + log1p(exp(-|x|))
    e = jnp.exp(-jnp.abs(x))                 # EUP exp (reused below)
    softplus = jnp.log1p(e)                  # EUP log1p
    relu_x = jnp.maximum(x, 0.0)
    xt = x * t
    bce = relu_x - xt + softplus

    # pt = exp(-bce) = exp(x*t - relu(x)) / (1 + exp(-|x|))
    if approx_reciprocal:
        inv_denom = pl.reciprocal(1.0 + e, approx=True)   # EUP vrcp, not divide
    else:
        inv_denom = 1.0 / (1.0 + e)
    if binary_targets:
        # Hard {0,1} targets: exp(x*t - relu(x)) is 1 when sign(x) agrees with
        # the label and exp(-|x|) (already computed) otherwise -> no extra exp.
        disagree = jnp.logical_xor(x >= 0.0, t > 0.5)
        pt_num = jnp.where(disagree, e, 1.0)
    else:
        pt_num = jnp.exp(xt - relu_x)        # EUP exp (soft labels only)
    pt = pt_num * inv_denom
    omp = jnp.maximum(1.0 - pt, 0.0)

    # (1 - pt) ** gamma, cheap forms for common gammas (no log/exp pair).
    if gamma == 1.5:
        pow_term = omp * jnp.sqrt(omp)
    elif gamma == 2.0:
        pow_term = omp * omp
    elif gamma == 1.0:
        pow_term = omp
    else:
        pow_term = jnp.power(omp, gamma)

    # alpha*t + (1-alpha)*(1-t) == (2*alpha - 1)*t + (1 - alpha)
    alpha_t = (2.0 * alpha - 1.0) * t + (1.0 - alpha)
    focal = alpha_t * pow_term * bce

    def _accumulate(vals):
        # Pure VPU accumulation into an (8, cols) partial-sum buffer.
        acc_ref[...] += jnp.sum(
            vals.reshape(block_rows // _SUB, _SUB, cols), axis=0)

    # Bulk blocks: no mask work at all.
    @pl.when(remaining >= block_rows)
    def _():
        _accumulate(focal)

    # At most one row-partial tail block per core: mask only there.
    @pl.when(jnp.logical_and(remaining > 0, remaining < block_rows))
    def _():
        row_ids = jax.lax.broadcasted_iota(jnp.int32, (block_rows, cols), 0)
        _accumulate(jnp.where(row_ids < remaining, focal, 0.0))

    # remaining <= 0: grid point is past the data (clamped DMA) -> contribute 0.

    @pl.when(i == pl.num_programs(1) - 1)
    def _():
        out_ref[0] = acc_ref[...]


def focal_bce_loss(inputs, targets, *, gamma=GAMMA, alpha=ALPHA,
                   binary_targets=False, approx_reciprocal=True,
                   lane_cols=1024, target_block_bytes=4 * 1024 * 1024,
                   num_cores=2):
    """Mean focal BCE loss over all elements (scalar, float32)."""
    assert inputs.shape == targets.shape
    total = int(inputs.size)
    lane_cols = _round_up(max(int(lane_cols), _LANE), _LANE)

    rows, cols = _choose_layout(inputs.shape, lane_cols)

    # Contiguous reshapes only -- no padding copy in HBM.
    x2 = inputs.reshape(rows, cols)
    t2 = targets.reshape(rows, cols)

    # Block sizing: ~target_block_bytes per input block, measured against the
    # lane-padded VMEM footprint so narrow `cols` can't blow up VMEM.
    itemsize = max(jnp.dtype(inputs.dtype).itemsize,
                   jnp.dtype(targets.dtype).itemsize)
    padded_cols = _round_up(cols, _LANE)
    br = max(_SUB, target_block_bytes // (padded_cols * itemsize))
    br = _round_up(min(br, rows), _SUB)

    blocks = pl.cdiv(rows, br)
    nc = max(1, min(int(num_cores), blocks))
    steps = pl.cdiv(blocks, nc)
    last_block = blocks - 1

    def in_index_map(c, i):
        # Clamp so grid points past the final block re-read (and then skip)
        # the last block instead of issuing an out-of-bounds DMA.
        return (jnp.minimum(c * steps + i, last_block), 0)

    kernel = functools.partial(
        _focal_bce_kernel,
        block_rows=br, cols=cols, steps=steps, rows=rows,
        gamma=gamma, alpha=alpha, binary_targets=binary_targets,
        approx_reciprocal=approx_reciprocal)

    partials = pl.pallas_call(
        kernel,
        out_shape=jax.ShapeDtypeStruct((nc, _SUB, cols), jnp.float32),
        grid_spec=pltpu.PrefetchScalarGridSpec(
            num_scalar_prefetch=0,
            grid=(nc, steps),
            in_specs=[
                pl.BlockSpec((br, cols), in_index_map),
                pl.BlockSpec((br, cols), in_index_map),
            ],
            out_specs=pl.BlockSpec((1, _SUB, cols), lambda c, i: (c, 0, 0)),
            scratch_shapes=[pltpu.VMEM((_SUB, cols), jnp.float32)],
        ),
        compiler_params=pltpu.CompilerParams(
            dimension_semantics=("parallel", "arbitrary"),
            vmem_limit_bytes=32 * 1024 * 1024,
        ),
    )(x2, t2)

    return jnp.sum(partials) / jnp.float32(total)


def _reference(inputs, targets, gamma=GAMMA, alpha=ALPHA):
    x = inputs.astype(jnp.float32)
    t = targets.astype(jnp.float32)
    bce = jnp.maximum(x, 0.0) - x * t + jnp.log1p(jnp.exp(-jnp.abs(x)))
    pt = jnp.exp(-bce)
    alpha_t = alpha * t + (1.0 - alpha) * (1.0 - t)
    focal = alpha_t * jnp.power(jnp.maximum(1.0 - pt, 0.0), gamma) * bce
    return jnp.mean(focal)


def _check(loss, ref, name):
    assert jnp.allclose(loss, ref, rtol=5e-3, atol=1e-5), (name, loss, ref)


if __name__ == "__main__":
    key = jax.random.PRNGKey(0)

    # Case 1: (batch, num_labels) logits -> one lane-dense block (partial rows).
    k1, k2, key = jax.random.split(key, 3)
    N, D = 16, 128
    logits = jax.random.normal(k1, (N, D), dtype=jnp.float32) * 2.0
    labels = jax.random.bernoulli(k2, p=0.3, shape=(N, D)).astype(jnp.float32)
    loss = jax.block_until_ready(focal_bce_loss(logits, labels))
    _check(loss, _reference(logits, labels), "case1")

    # Case 2: ragged shape (natural-layout path, no padding, masked tail rows).
    k1, k2, key = jax.random.split(key, 3)
    logits2 = jax.random.normal(k1, (37, 23), dtype=jnp.float32) * 3.0
    labels2 = jax.random.bernoulli(k2, p=0.5, shape=(37, 23)).astype(jnp.float32)
    loss2 = jax.block_until_ready(focal_bce_loss(logits2, labels2))
    _check(loss2, _reference(logits2, labels2), "case2")

    # Case 3: multi-step grid, both core groups, odd block count (clamp+skip).
    k1, k2, key = jax.random.split(key, 3)
    logits3 = jax.random.normal(k1, (48, 512), dtype=jnp.float32)
    labels3 = jax.random.bernoulli(k2, p=0.2, shape=(48, 512)).astype(jnp.float32)
    loss3 = jax.block_until_ready(
        focal_bce_loss(logits3, labels3, target_block_bytes=32 * 1024))
    _check(loss3, _reference(logits3, labels3), "case3")

    # Case 4: multi-step grid with a row-partial tail block (masked accumulate).
    k1, k2, key = jax.random.split(key, 3)
    logits4 = jax.random.normal(k1, (50, 512), dtype=jnp.float32) * 2.0
    labels4 = jax.random.bernoulli(k2, p=0.4, shape=(50, 512)).astype(jnp.float32)
    loss4 = jax.block_until_ready(
        focal_bce_loss(logits4, labels4, target_block_bytes=32 * 1024))
    _check(loss4, _reference(logits4, labels4), "case4")

    # Case 5: bf16 inputs (half HBM bytes) + hard-label pt shortcut (fewer EUP).
    k1, k2, key = jax.random.split(key, 3)
    logits5 = (jax.random.normal(k1, (24, 256), dtype=jnp.float32) * 2.0
               ).astype(jnp.bfloat16)
    labels5 = jax.random.bernoulli(k2, p=0.5, shape=(24, 256)).astype(jnp.bfloat16)
    loss5 = jax.block_until_ready(
        focal_bce_loss(logits5, labels5, binary_targets=True))
    _check(loss5, _reference(logits5, labels5), "case5")

    print("KERNEL_OK")
</pallas_src>

<mosaic_0001>
module attributes {stable_mosaic.version = 11 : i64} {
  func.func @_focal_bce_kernel(%arg0: i32, %arg1: i32, %arg2: memref<8x1024xf32, #tpu.memory_space<vmem>>, %arg3: memref<8x1024xf32, #tpu.memory_space<vmem>>, %arg4: memref<1x8x1024xf32, #tpu.memory_space<vmem>>, %arg5: memref<8x1024xf32, #tpu.memory_space<vmem>>) attributes {dimension_semantics = [#tpu.dimension_semantics<parallel>, #tpu.dimension_semantics<arbitrary>], iteration_bounds = array<i64: 1, 1>, scalar_prefetch = 0 : i64, scratch_operands = 1 : i64, tpu.core_type = #tpu.core_type<tc>, window_params = [{transform_indices = @transform_0, window_bounds = array<i64: 8, 1024>}, {transform_indices = @transform_1, window_bounds = array<i64: 8, 1024>}, {transform_indices = @transform_2, window_bounds = array<i64: 1, 8, 1024>}]} {
    %c0_i32 = arith.constant 0 : i32
    %0 = arith.cmpi eq, %arg1, %c0_i32 : i32
    %1 = arith.extui %0 : i1 to i32
    %c0_i32_0 = arith.constant 0 : i32
    %2 = arith.cmpi ne, %1, %c0_i32_0 : i32
    scf.if %2 {
      %cst_17 = arith.constant 0.000000e+00 : f32
      %48 = vector.broadcast %cst_17 : f32 to vector<8x1024xf32>
      %c0_18 = arith.constant 0 : index
      %c0_19 = arith.constant 0 : index
      %49 = vector.load %arg5[%c0_18, %c0_19] : memref<8x1024xf32, #tpu.memory_space<vmem>>, vector<8x1024xf32>
      tpu.vector_store %arg5[%c0_18, %c0_19], %48 {strides = array<i32>} : memref<8x1024xf32, #tpu.memory_space<vmem>>, vector<8x1024xf32>,
    } else {
    }
    %c1_i32 = arith.constant 1 : i32
    %3 = arith.muli %arg0, %c1_i32 : i32
    %4 = arith.addi %3, %arg1 : i32
    %c8_i32 = arith.constant 8 : i32
    %5 = arith.muli %4, %c8_i32 : i32
    %c2_i32 = arith.constant 2 : i32
    %6 = arith.subi %c2_i32, %5 : i32
    %c0 = arith.constant 0 : index
    %c0_1 = arith.constant 0 : index
    %7 = vector.load %arg2[%c0, %c0_1] : memref<8x1024xf32, #tpu.memory_space<vmem>>, vector<8x1024xf32>
    %c0_2 = arith.constant 0 : index
    %c0_3 = arith.constant 0 : index
    %8 = vector.load %arg3[%c0_2, %c0_3] : memref<8x1024xf32, #tpu.memory_space<vmem>>, vector<8x1024xf32>
    %9 = math.absf %7 : vector<8x1024xf32>
    %cst = arith.constant 0.000000e+00 : f32
    %10 = vector.broadcast %cst : f32 to vector<8x1024xf32>
    %11 = arith.subf %10, %9 : vector<8x1024xf32>
    %12 = math.exp %11 : vector<8x1024xf32>
    %13 = math.log1p %12 : vector<8x1024xf32>
    %cst_4 = arith.constant 0.000000e+00 : f32
    %14 = vector.broadcast %cst_4 : f32 to vector<8x1024xf32>
    %15 = arith.maximumf %7, %14 : vector<8x1024xf32>
    %16 = arith.mulf %7, %8 : vector<8x1024xf32>
    %17 = arith.subf %15, %16 : vector<8x1024xf32>
    %18 = arith.addf %17, %13 : vector<8x1024xf32>
    %cst_5 = arith.constant 1.000000e+00 : f32
    %19 = vector.broadcast %cst_5 : f32 to vector<8x1024xf32>
    %20 = arith.addf %19, %12 : vector<8x1024xf32>
    %21 = tpu.reciprocal %20 {approx = true} : vector<8x1024xf32> -> vector<8x1024xf32>
    %22 = arith.subf %16, %15 : vector<8x1024xf32>
    %23 = math.exp %22 : vector<8x1024xf32>
    %24 = arith.mulf %23, %21 : vector<8x1024xf32>
    %cst_6 = arith.constant 1.000000e+00 : f32
    %25 = vector.broadcast %cst_6 : f32 to vector<8x1024xf32>
    %26 = arith.subf %25, %24 : vector<8x1024xf32>
    %cst_7 = arith.constant 0.000000e+00 : f32
    %27 = vector.broadcast %cst_7 : f32 to vector<8x1024xf32>
    %28 = arith.maximumf %26, %27 : vector<8x1024xf32>
    %29 = math.sqrt %28 : vector<8x1024xf32>
    %30 = arith.mulf %28, %29 : vector<8x1024xf32>
    %cst_8 = arith.constant 2.000000e-01 : f32
    %31 = vector.broadcast %cst_8 : f32 to vector<8x1024xf32>
    %32 = arith.mulf %31, %8 : vector<8x1024xf32>
    %cst_9 = arith.constant 4.000000e-01 : f32
    %33 = vector.broadcast %cst_9 : f32 to vector<8x1024xf32>
    %34 = arith.addf %32, %33 : vector<8x1024xf32>
    %35 = arith.mulf %34, %30 : vector<8x1024xf32>
    %36 = arith.mulf %35, %18 : vector<8x1024xf32>
    %c8_i32_10 = arith.constant 8 : i32
    %37 = arith.cmpi sge, %6, %c8_i32_10 : i32
    %38 = arith.extui %37 : i1 to i32
    %c0_i32_11 = arith.constant 0 : i32
    %39 = arith.cmpi ne, %38, %c0_i32_11 : i32
    scf.if %39 {
      %c0_17 = arith.constant 0 : index
      %c0_18 = arith.constant 0 : index
      %48 = vector.load %arg5[%c0_17, %c0_18] : memref<8x1024xf32, #tpu.memory_space<vmem>>, vector<8x1024xf32>
      %49 = vector.shape_cast %36 : vector<8x1024xf32> to vector<1x8x1024xf32>
      %cst_19 = arith.constant dense<0.000000e+00> : vector<8x1024xf32>
      %50 = vector.multi_reduction <add>, %49, %cst_19 [0] : vector<1x8x1024xf32> to vector<8x1024xf32>
      %51 = arith.addf %48, %50 : vector<8x1024xf32>
      %c0_20 = arith.constant 0 : index
      %c0_21 = arith.constant 0 : index
      %52 = vector.load %arg5[%c0_20, %c0_21] : memref<8x1024xf32, #tpu.memory_space<vmem>>, vector<8x1024xf32>
      tpu.vector_store %arg5[%c0_20, %c0_21], %51 {strides = array<i32>} : memref<8x1024xf32, #tpu.memory_space<vmem>>, vector<8x1024xf32>,
    } else {
    }
    %c0_i32_12 = arith.constant 0 : i32
    %40 = arith.cmpi sgt, %6, %c0_i32_12 : i32
    %c8_i32_13 = arith.constant 8 : i32
    %41 = arith.cmpi slt, %6, %c8_i32_13 : i32
    %42 = arith.andi %40, %41 : i1
    %43 = arith.extui %42 : i1 to i32
    %c0_i32_14 = arith.constant 0 : i32
    %44 = arith.cmpi ne, %43, %c0_i32_14 : i32
    scf.if %44 {
      %48 = tpu.iota {dimensions = array<i32: 0>} : vector<8x1024xi32>
      %49 = vector.broadcast %6 : i32 to vector<8x1024xi32>
      %50 = arith.cmpi slt, %48, %49 : vector<8x1024xi32>
      %cst_17 = arith.constant 0.000000e+00 : f32
      %51 = vector.broadcast %cst_17 : f32 to vector<8x1024xf32>
      %52 = arith.select %50, %36, %51 : vector<8x1024xi1>, vector<8x1024xf32>
      %c0_18 = arith.constant 0 : index
      %c0_19 = arith.constant 0 : index
      %53 = vector.load %arg5[%c0_18, %c0_19] : memref<8x1024xf32, #tpu.memory_space<vmem>>, vector<8x1024xf32>
      %54 = vector.shape_cast %52 : vector<8x1024xf32> to vector<1x8x1024xf32>
      %cst_20 = arith.constant dense<0.000000e+00> : vector<8x1024xf32>
      %55 = vector.multi_reduction <add>, %54, %cst_20 [0] : vector<1x8x1024xf32> to vector<8x1024xf32>
      %56 = arith.addf %53, %55 : vector<8x1024xf32>
      %c0_21 = arith.constant 0 : index
      %c0_22 = arith.constant 0 : index
      %57 = vector.load %arg5[%c0_21, %c0_22] : memref<8x1024xf32, #tpu.memory_space<vmem>>, vector<8x1024xf32>
      tpu.vector_store %arg5[%c0_21, %c0_22], %56 {strides = array<i32>} : memref<8x1024xf32, #tpu.memory_space<vmem>>, vector<8x1024xf32>,
    } else {
    }
    %c0_i32_15 = arith.constant 0 : i32
    %45 = arith.cmpi eq, %arg1, %c0_i32_15 : i32
    %46 = arith.extui %45 : i1 to i32
    %c0_i32_16 = arith.constant 0 : i32
    %47 = arith.cmpi ne, %46, %c0_i32_16 : i32
    scf.if %47 {
      %c0_17 = arith.constant 0 : index
      %c0_18 = arith.constant 0 : index
      %48 = vector.load %arg5[%c0_17, %c0_18] : memref<8x1024xf32, #tpu.memory_space<vmem>>, vector<8x1024xf32>
      %c0_19 = arith.constant 0 : index
      %c0_20 = arith.constant 0 : index
      %c0_21 = arith.constant 0 : index
      %49 = vector.load %arg4[%c0_19, %c0_20, %c0_21] : memref<1x8x1024xf32, #tpu.memory_space<vmem>>, vector<1x8x1024xf32>
      %50 = vector.shape_cast %49 : vector<1x8x1024xf32> to vector<8x1024xf32>
      %51 = vector.shape_cast %48 : vector<8x1024xf32> to vector<1x8x1024xf32>
      tpu.vector_store %arg4[%c0_19, %c0_20, %c0_21], %51 {strides = array<i32>} : memref<1x8x1024xf32, #tpu.memory_space<vmem>>, vector<1x8x1024xf32>,
    } else {
    }
    return
  }
  func.func @transform_0(%arg0: i32, %arg1: i32) -> (i32, i32) {
    %c1_i32 = arith.constant 1 : i32
    %0 = arith.muli %arg0, %c1_i32 : i32
    %1 = arith.addi %0, %arg1 : i32
    %c0_i32 = arith.constant 0 : i32
    %2 = arith.minsi %1, %c0_i32 : i32
    %c0_i32_0 = arith.constant 0 : i32
    %c0_i32_1 = arith.constant 0 : i32
    return %2, %c0_i32_0 : i32, i32
  }
  func.func @transform_1(%arg0: i32, %arg1: i32) -> (i32, i32) {
    %c1_i32 = arith.constant 1 : i32
    %0 = arith.muli %arg0, %c1_i32 : i32
    %1 = arith.addi %0, %arg1 : i32
    %c0_i32 = arith.constant 0 : i32
    %2 = arith.minsi %1, %c0_i32 : i32
    %c0_i32_0 = arith.constant 0 : i32
    %c0_i32_1 = arith.constant 0 : i32
    return %2, %c0_i32_0 : i32, i32
  }
  func.func @transform_2(%arg0: i32, %arg1: i32) -> (i32, i32, i32) {
    %c0_i32 = arith.constant 0 : i32
    %c0_i32_0 = arith.constant 0 : i32
    %c0_i32_1 = arith.constant 0 : i32
    return %arg0, %c0_i32, %c0_i32_0 : i32, i32, i32
  }
}

</mosaic_0001>

<bundles_post_ra>
// kernel: tpu_custom_call.1
= control target key start
LH: loop header
LB: loop body
LE: loop exit
PB: predicated region body
PF: predicated region fallthrough
CT: control target
= control target key end

     0   :  { %7 = vsyncpa [#allocation4], 0  ;;  %s1314_s0 = inlined_call_operand.hbm [shape: f32[2,1024], index: 0, kind: input, shape index: {}]   ;;  %s1315_s1 = inlined_call_operand.hbm [shape: f32[2,1024], index: 1, kind: input, shape index: {}]   ;;  %s1316_s2 = inlined_call_operand.hbm [shape: f32[1,8,1024], index: 2, kind: output, shape index: {}]  }
   0x1   :  { %8 = vsyncpa [#allocation7], 0 }
   0x2   :  { %9 = vsyncpa [#allocation5], 0 }
   0x3   :  { %21 = vsyncadd [#allocation4], 768  ;;  %s864_s9 = smov [#allocation3]   ;;  %s792_s13 = scalar_lea.hbm %s1314_s0, 256 }
   0x4   :  { %s27_s10 = sshll.u32 %s864_s9, 4  ;;  %p793_p0 = scmp.ne.s32.totalorder %s1314_s0, %s792_s13  ;;  %s28_s10 = int_to_ptr.vmem [resolvable:$true] %s27_s10 }
   0x5   :  { %p796_p1 = scmp.lt.u32.totalorder %s792_s13, %s1314_s0 }
   0x7   :  { %p798_p2 = pnand %p796_p1, %p793_p0 }
   0x9   :  { %801 = shalt.err (!%p798_p2)
}
   0xa   :  { %s802_s18 = scalar_lea.vmem %s28_s10, 256  ;;  %s806_s19 = scalar_lea.vmem %s28_s10, 1024 }
   0xb   :  { %p803_p3 = scmp.ne.s32.totalorder %s28_s10, %s802_s18  ;;  %p807_p4 = scmp.lt.s32.totalorder %s28_s10, %s28_s10 }
   0xc   :  { %p808_p5 = scmp.lt.s32.totalorder %s806_s19, %s802_s18 }
   0xe   :  { %p809_p6 = por %p808_p5, %p807_p4 }
  0x10   :  { %p810_p7 = pnand %p809_p6, %p803_p3 }
  0x12   :  { %813 = shalt.err (!%p810_p7)
}
  0x13   :  { %s865_s20 = smov 256   ;;  %s866_s21 = smov 16  }
  0x14   :  { %33 = dma.hbm_to_vmem [thread:$0]  %s1314_s0, 256, %s28_s10, [#allocation4], %s865_s20, %s865_s20, %s866_s21  }
  0x15   :  { %45 = vsyncadd [#allocation7], 768  ;;  %s867_s24 = smov [#allocation6]   ;;  %s814_s28 = scalar_lea.hbm %s1315_s1, 256 }
  0x16   :  { %s51_s25 = sshll.u32 %s867_s24, 4  ;;  %p815_p8 = scmp.ne.s32.totalorder %s1315_s1, %s814_s28  ;;  %s52_s25 = int_to_ptr.vmem [resolvable:$true] %s51_s25 }
  0x17   :  { %p818_p9 = scmp.lt.u32.totalorder %s814_s28, %s1315_s1 }
  0x19   :  { %p820_p10 = pnand %p818_p9, %p815_p8 }
  0x1b   :  { %823 = shalt.err (!%p820_p10)
}
  0x1c   :  { %s824_s5 = scalar_lea.vmem %s52_s25, 256  ;;  %s828_s0 = scalar_lea.vmem %s52_s25, 1024 }
  0x1d   :  { %p825_p11 = scmp.ne.s32.totalorder %s52_s25, %s824_s5  ;;  %p829_p12 = scmp.lt.s32.totalorder %s52_s25, %s52_s25 }
  0x1e   :  { %p830_p13 = scmp.lt.s32.totalorder %s828_s0, %s824_s5 }
  0x20   :  { %p831_p0 = por %p830_p13, %p829_p12 }
  0x22   :  { %p832_p1 = pnand %p831_p0, %p825_p11 }
  0x24   :  { %835 = shalt.err (!%p832_p1)
}
  0x25   :  { %57 = dma.hbm_to_vmem [thread:$0]  %s1315_s1, 256, %s52_s25, [#allocation7], %s865_s20, %s865_s20, %s866_s21  }
  0x26   :  { %858 = dma.done.wait [#allocation4], 1024  }
  0x27   :  { %859 = vsyncadd [#allocation4], 4294966272 }
  0x28   :  { %860 = dma.done.wait [#allocation7], 1024  }
  0x29   :  { %861 = vsyncadd [#allocation7], 4294966272  ;;  %v909_v0 = vld [vmem:[#allocation3] sm:$0xff]  ;;  %v911_v1 = vld [vmem:[#allocation3 + $0x10] sm:$0xff]  ;;  %v535_v38 = vlaneseq  ;;  %v868_v39 = vmov 1983009808  }
  0x2a   :  { %v913_v2 = vld [vmem:[#allocation3 + $0x20] sm:$0xff]  ;;  %v915_v3 = vld [vmem:[#allocation3 + $0x30] sm:$0xff]  ;;  %v109_v4 = vand.u32 2147483647, %v909_v0  ;;  %v111_v5 = vand.u32 2147483647, %v911_v1  ;;  %v552_v40 = vunpack.c.l.s4 %v868_v39 }
  0x2b   :  { %v113_v6 = vand.u32 2147483647, %v913_v2  ;;  %v115_v7 = vand.u32 2147483647, %v915_v3  ;;  %v101_v11 = vld [vmem:[#allocation6] sm:$0xff]  ;;  %v103_v14 = vld [vmem:[#allocation6 + $0x10] sm:$0xff] }
  0x2c   :  { %v117_v8 = vsub.f32 0.0, %v109_v4  ;;  %v119_v9 = vsub.f32 0.0, %v111_v5  ;;  %v105_v17 = vld [vmem:[#allocation6 + $0x20] sm:$0xff]  ;;  %v921_v19 = vld [vmem:[#allocation6 + $0x30] sm:$0xff]  ;;  %v213_v20 = vmax.f32 %v909_v0, 0.0  ;;  %v221_v21 = vmul.f32 %v101_v11, %v909_v0  ;;  %v927_v24 = vld [vmem:[#allocation3 + $0x8] sm:$0xff] }
  0x2d   :  { %v121_v10 = vsub.f32 0.0, %v113_v6  ;;  %v123_v12 = vsub.f32 0.0, %v115_v7  ;;  %v215_v22 = vmax.f32 %v911_v1, 0.0  ;;  %v223_v23 = vmul.f32 %v103_v14, %v911_v1  ;;  %v929_v25 = vld [vmem:[#allocation3 + $0x18] sm:$0xff]  ;;  %v945_v47 = vld [vmem:[#allocation3 + $0x28] sm:$0xff]  ;;  %s869_s1 = smov [#allocation8]  }
  0x2e   :  { %v125_v13 = vmul.f32 1.442695, %v117_v8  ;;  %v129_v15 = vmul.f32 1.442695, %v119_v9  ;;  %v217_v26 = vmax.f32 %v913_v2, 0.0  ;;  %v225_v27 = vmul.f32 %v105_v17, %v913_v2  ;;  %v951_v52 = vld [vmem:[#allocation3 + $0x38] sm:$0xff] }
  0x2f   :  { %v133_v16 = vmul.f32 1.442695, %v121_v10  ;;  %v137_v18 = vmul.f32 1.442695, %v123_v12  ;;  %v219_v28 = vmax.f32 %v915_v3, 0.0  ;;  %v936_v29 = vmul.f32 %v921_v19, %v915_v3  ;;  %v968_v2 = vld [vmem:[#allocation6 + $0x8] sm:$0xff] }
  0x30   :  { %712 = vpow2.f32 %v125_v13  ;;  %v261_v30 = vsub.f32 %v221_v21, %v213_v20  ;;  %v110_v31 = vand.u32 2147483647, %v927_v24  ;;  %v112_v32 = vand.u32 2147483647, %v929_v25  ;;  %v974_v6 = vld [vmem:[#allocation6 + $0x18] sm:$0xff]  ;;  %s692_s8 = sshll.u32 %s869_s1, 4  ;;  %s693_s8 = int_to_ptr.vmem [resolvable:$true] %s692_s8 }
  0x31   :  { %714 = vpow2.f32 %v129_v15  ;;  %v263_v33 = vsub.f32 %v223_v23, %v215_v22  ;;  %v265_v34 = vsub.f32 %v225_v27, %v217_v26  ;;  %v267_v37 = vsub.f32 %v936_v29, %v219_v28  ;;  %s836_s9 = scalar_lea.vmem %s693_s8, 1024  ;;  %p841_p3 = scmp.lt.s32.totalorder %s693_s8, %s693_s8 }
  0x32   :  { %716 = vpow2.f32 %v133_v16  ;;  %v118_v35 = vsub.f32 0.0, %v110_v31  ;;  %v120_v36 = vsub.f32 0.0, %v112_v32  ;;  %v269_v41 = vmul.f32 1.442695, %v261_v30  ;;  %p837_p2 = scmp.ne.s32.totalorder %s693_s8, %s836_s9  ;;  %p842_p4 = scmp.lt.s32.totalorder %s836_s9, %s836_s9 }
  0x33   :  { %718 = vpow2.f32 %v137_v18  ;;  %v273_v44 = vmul.f32 1.442695, %v263_v33  ;;  %v277_v46 = vmul.f32 1.442695, %v265_v34  ;;  %v281_v49 = vmul.f32 1.442695, %v267_v37 }
  0x34   :  { %v127_v42 = vmul.f32 1.442695, %v118_v35  ;;  %v131_v43 = vmul.f32 1.442695, %v120_v36  ;;  %v949_v50 = vshrl.u32 %v535_v38, 7  ;;  %v553_v51 = vunpack.c.0.s8 %v552_v40  ;;  %v1008_v33 = vld [vmem:[#allocation6 + $0x28] sm:$0xff]  ;;  %p843_p5 = por %p842_p4, %p841_p3 }
  0x35   :  { %v114_v56 = vand.u32 2147483647, %v945_v47  ;;  %v373_v58 = vmul.f32 0.2, %v101_v11  ;;  %v116_v59 = vand.u32 2147483647, %v951_v52  ;;  %v966_v0 = vsub.f32 %v213_v20, %v221_v21 }
  0x36   :  { %720 = vpow2.f32 %v127_v42  ;;  %v375_v61 = vmul.f32 0.2, %v103_v14  ;;  %v963_v62 = vsub.s32 %v553_v51, %v949_v50  ;;  %v377_v1 = vmul.f32 0.2, %v105_v17  ;;  %p844_p6 = pnand %p843_p5, %p837_p2 }
  0x37   :  { %722 = vpow2.f32 %v131_v43  ;;  %v970_v4 = vsub.f32 %v215_v22, %v223_v23  ;;  %v972_v5 = vsub.f32 %v217_v26, %v225_v27  ;;  %v122_v7 = vsub.f32 0.0, %v114_v56 }
  0x38   :  { %724 = vpow2.f32 %v269_v41  ;;  %v379_v8 = vmul.f32 0.2, %v921_v19  ;;  %v977_v9 = vadd.f32 0.4, %v373_v58  ;;  %v124_v10 = vsub.f32 0.0, %v116_v59 }
  0x39   :  { %726 = vpow2.f32 %v273_v44  ;;  %v979_v11 = vadd.f32 0.4, %v375_v61  ;;  %v214_v12 = vmax.f32 %v927_v24, 0.0  ;;  %v984_v13 = vmul.f32 %v968_v2, %v927_v24 }
  0x3a   :  { %v943_v45 = vpop.eup %712  ;;  %728 = vpow2.f32 %v277_v46  ;;  %v988_v15 = vadd.f32 0.4, %v377_v1  ;;  %v216_v16 = vmax.f32 %v929_v25, 0.0  ;;  %v993_v17 = vmul.f32 %v974_v6, %v929_v25 }
  0x3b   :  { %v947_v48 = vpop.eup %714  ;;  %v141_v55 = vadd.f32 1.0, %v943_v45  ;;  %730 = vpow2.f32 %v281_v49  ;;  %v144_v19 = vmul.f32 -0.5, %v943_v45  ;;  %v135_v21 = vmul.f32 1.442695, %v122_v7  ;;  %v1042_v7 = vld [vmem:[#allocation6 + $0x38] sm:$0xff] }
  0x3c   :  { %v953_v53 = vpop.eup %716  ;;  %v159_v57 = vadd.f32 1.0, %v947_v48  ;;  %v162_v20 = vmul.f32 -0.5, %v947_v48  ;;  %v147_v23 = vand.u32 2147483647, %v943_v45  ;;  %v1003_v26 = vsub.f32 %v219_v28, %v936_v29 }
  0x3d   :  { %v955_v54 = vpop.eup %718  ;;  %v177_v60 = vadd.f32 1.0, %v953_v53  ;;  %732 = vlog2.f32 %v141_v55  ;;  %v1005_v27 = vadd.f32 0.4, %v379_v8  ;;  %v139_v30 = vmul.f32 1.442695, %v124_v10 }
  0x3e   :  { %v195_v63 = vadd.f32 1.0, %v955_v54  ;;  %734 = vrcp.f32 %v141_v55  ;;  %v165_v32 = vand.u32 2147483647, %v947_v48  ;;  %v262_v35 = vsub.f32 %v984_v13, %v214_v12 }
  0x3f   :  { %736 = vrcp.f32 %v159_v57  ;;  %v180_v3 = vmul.f32 -0.5, %v953_v53  ;;  %v264_v29 = vsub.f32 %v993_v17, %v216_v16  ;;  %v145_v38 = vadd.f32 1.0, %v144_v19 }
  0x40   :  { %738 = vrcp.f32 %v177_v60  ;;  %v986_v14 = vpop.eup %720  ;;  %v163_v39 = vadd.f32 1.0, %v162_v20  ;;  %v218_v40 = vmax.f32 %v945_v47, 0.0  ;;  %vm1024_vm0 = vcmp.lt.f32.partialorder %v147_v23, 0.0004427343 }
  0x41   :  { %740 = vrcp.f32 %v195_v63  ;;  %v995_v18 = vpop.eup %722  ;;  %v1011_v34 = vadd.f32 1.0, %v986_v14  ;;  %v220_v43 = vmax.f32 %v951_v52, 0.0  ;;  %v1031_v44 = vmul.f32 %v1008_v33, %v945_v47 }
  0x42   :  { %742 = vlog2.f32 %v159_v57  ;;  %v725_v22 = vpop.eup %724  ;;  %v1018_v28 = vadd.f32 1.0, %v995_v18  ;;  %vm1033_vm1 = vcmp.lt.f32.partialorder %v165_v32, 0.0004427343  ;;  %v183_v51 = vand.u32 2147483647, %v953_v53 }
  0x43   :  { %v727_v31 = vpop.eup %726  ;;  %744 = vlog2.f32 %v177_v60  ;;  %v271_v55 = vmul.f32 1.442695, %v262_v35  ;;  %v181_v57 = vadd.f32 1.0, %v180_v3  ;;  %v275_v59 = vmul.f32 1.442695, %v264_v29 }
  0x44   :  { %v729_v36 = vpop.eup %728  ;;  %746 = vlog2.f32 %v195_v63  ;;  %v146_v61 = vmul.f32 %v943_v45, %v145_v38  ;;  %v164_v63 = vmul.f32 %v947_v48, %v163_v39  ;;  %v198_v10 = vmul.f32 -0.5, %v955_v54 }
  0x45   :  { %v731_v37 = vpop.eup %730  ;;  %748 = vpow2.f32 %v135_v21  ;;  %vm1045_vm2 = vcmp.lt.f32.partialorder %v183_v51, 0.0004427343  ;;  %v201_v23 = vand.u32 2147483647, %v955_v54  ;;  %v1051_v48 = vmul.f32 %v953_v53, %v181_v57 }
  0x46   :  { %750 = vpow2.f32 %v139_v30  ;;  %v1057_v35 = vmul.f32 %v1042_v7, %v951_v52  ;;  %v199_v53 = vadd.f32 1.0, %v198_v10  ;;  %v1076_v57 = vsub.f32 %v214_v12, %v984_v13 }
  0x47   :  { %v733_v41 = vpop.eup %732  ;;  %752 = vrcp.f32 %v1011_v34  ;;  %vm1098_vm3 = vcmp.lt.f32.partialorder %v201_v23, 0.0004427343  ;;  %v174_v49 = vand.u32 2147483647, %v995_v18  ;;  %vm538_vm13 = vcmp.lt.s32.totalorder %v949_v50, 2 }
  0x48   :  { %v735_v46 = vpop.eup %734  ;;  %754 = vrcp.f32 %v1018_v28  ;;  %v143_v3 = vmul.f32 0.6931472, %v733_v41  ;;  %v153_v41 = vmul.f32 -0.5, %v986_v14  ;;  %v1096_v25 = vmul.f32 %v955_v54, %v199_v53 }
  0x49   :  { %v737_v56 = vpop.eup %736  ;;  %v285_v58 = vmul.f32 %v735_v46, %v725_v22  ;;  %756 = vpow2.f32 %v271_v55  ;;  %vm1204_vm14 = vcmp.lt.f32.partialorder %v174_v49, 0.0004427343 }
  0x4a   :  { %v739_v60 = vpop.eup %738  ;;  %v287_v1 = vmul.f32 %v737_v56, %v727_v31  ;;  %758 = vpow2.f32 %v275_v59  ;;  %v171_v59 = vmul.f32 -0.5, %v995_v18  ;;  %v149_v24 = vsel %vm1024_vm0, %v146_v61, %v143_v3 }
  0x4b   :  { %v741_v8 = vpop.eup %740  ;;  %v289_v19 = vmul.f32 %v739_v60, %v729_v36  ;;  %v293_v20 = vsub.f32 1.0, %v285_v58  ;;  %v1085_v60 = vsub.f32 %v216_v16, %v993_v17  ;;  %v156_v17 = vand.u32 2147483647, %v986_v14 }
  0x4c   :  { %v743_v21 = vpop.eup %742  ;;  %v291_v45 = vmul.f32 %v741_v8, %v731_v37  ;;  %v295_v30 = vsub.f32 1.0, %v287_v1  ;;  %v266_v37 = vsub.f32 %v1031_v44, %v218_v40  ;;  %v268_v1 = vsub.f32 %v1057_v35, %v220_v43 }
  0x4d   :  { %v297_v31 = vsub.f32 1.0, %v289_v19  ;;  %v1053_v32 = vmax.f32 %v293_v20, 0.0  ;;  %v745_v36 = vpop.eup %744  ;;  %v161_v46 = vmul.f32 0.6931472, %v743_v21  ;;  %v1107_v20 = vadd.f32 1.0, %v153_v41 }
  0x4e   :  { %v299_v29 = vsub.f32 1.0, %v291_v45  ;;  %v1059_v38 = vmax.f32 %v295_v30, 0.0  ;;  %v747_v39 = vpop.eup %746  ;;  %v179_v12 = vmul.f32 0.6931472, %v745_v36  ;;  %v279_v13 = vmul.f32 1.442695, %v266_v37 }
  0x4f   :  { %v1064_v51 = vmax.f32 %v297_v31, 0.0  ;;  %760 = vrsqrt.f32 %v1053_v32  ;;  %v1067_v55 = vpop.eup %748  ;;  %v167_v19 = vsel %vm1033_vm1, %v164_v63, %v161_v46  ;;  %v1114_v21 = vadd.f32 %v966_v0, %v149_v24 }
  0x50   :  { %v1069_v56 = vmax.f32 %v299_v29, 0.0  ;;  %762 = vrsqrt.f32 %v1059_v38  ;;  %v1078_v58 = vpop.eup %750  ;;  %v1104_v42 = vadd.f32 1.0, %v1067_v55  ;;  %v1117_v23 = vadd.f32 1.0, %v171_v59 }
  0x51   :  { %764 = vrsqrt.f32 %v1064_v51  ;;  %v753_v8 = vpop.eup %752  ;;  %v1111_v63 = vadd.f32 1.0, %v1078_v58  ;;  %v283_v45 = vmul.f32 1.442695, %v268_v1  ;;  %v197_v30 = vmul.f32 0.6931472, %v747_v39 }
  0x52   :  { %766 = vrsqrt.f32 %v1069_v56  ;;  %v755_v10 = vpop.eup %754  ;;  %v1123_v31 = vadd.f32 %v970_v4, %v167_v19  ;;  %vm311_vm4 = vcmp.eq.f32.partialorder %v1053_v32, inf  ;;  %vm313_vm5 = vcmp.eq.f32.partialorder %v1053_v32, 0.0 }
  0x53   :  { %v757_v61 = vpop.eup %756  ;;  %768 = vlog2.f32 %v1011_v34  ;;  %v185_v34 = vsel %vm1045_vm2, %v1051_v48, %v179_v12  ;;  %vm325_vm6 = vcmp.eq.f32.partialorder %v1059_v38, inf  ;;  %vm327_vm7 = vcmp.eq.f32.partialorder %v1059_v38, 0.0 }
  0x54   :  { %v759_v54 = vpop.eup %758  ;;  %770 = vlog2.f32 %v1018_v28  ;;  %v286_v0 = vmul.f32 %v757_v61, %v753_v8  ;;  %v314_v28 = vand.u32 2147483648, %v1053_v32  ;;  %v328_v4 = vand.u32 2147483648, %v1059_v38 }
  0x55   :  { %772 = vpow2.f32 %v279_v13  ;;  %v288_v22 = vmul.f32 %v759_v54, %v755_v10  ;;  %vm339_vm8 = vcmp.eq.f32.partialorder %v1064_v51, inf  ;;  %vm341_vm9 = vcmp.eq.f32.partialorder %v1064_v51, 0.0 }
  0x56   :  { %774 = vrcp.f32 %v1104_v42  ;;  %v294_v36 = vsub.f32 1.0, %v286_v0  ;;  %v342_v37 = vand.u32 2147483648, %v1064_v51  ;;  %vm353_vm10 = vcmp.eq.f32.partialorder %v1069_v56, inf }
  0x57   :  { %776 = vrcp.f32 %v1111_v63  ;;  %vm355_vm11 = vcmp.eq.f32.partialorder %v1069_v56, 0.0  ;;  %v356_v8 = vand.u32 2147483648, %v1069_v56  ;;  %v296_v24 = vsub.f32 1.0, %v288_v22 }
  0x58   :  { %778 = vpow2.f32 %v283_v45  ;;  %v1140_v53 = vmax.f32 %v294_v36, 0.0  ;;  %v203_v61 = vsel %vm1098_vm3, %v1096_v25, %v197_v30  ;;  %v241_v22 = vadd.f32 %v972_v5, %v185_v34 }
  0x59   :  { %v761_v48 = vpop.eup %760  ;;  %v243_v34 = vadd.f32 %v1003_v26, %v203_v61  ;;  %vm1185_vm12 = vcmp.lt.f32.partialorder %v156_v17, 0.0004427343  ;;  %v1197_v26 = vmul.f32 0.2, %v968_v2 }
  0x5a   :  { %v763_v3 = vpop.eup %762  ;;  %v310_v29 = vmul.f32 %v761_v48, %v1053_v32  ;;  %780 = vrsqrt.f32 %v1140_v53  ;;  %vm318_vm15 = vcmp.eq.f32.partialorder %v1140_v53, inf  ;;  %vm320_vm0 = vcmp.eq.f32.partialorder %v1140_v53, 0.0 }
  0x5b   :  { %v765_v39 = vpop.eup %764  ;;  %v324_v46 = vmul.f32 %v763_v3, %v1059_v38  ;;  %v1174_v3 = vmax.f32 %v296_v24, 0.0  ;;  %782 = vlog2.f32 %v1104_v42 }
  0x5c   :  { %v767_v41 = vpop.eup %766  ;;  %v312_v59 = vsel %vm311_vm4, %v1053_v32, %v310_v29  ;;  %v338_v1 = vmul.f32 %v765_v39, %v1064_v51 }
  0x5d   :  { %v315_v12 = vsel %vm313_vm5, %v314_v28, %v312_v59  ;;  %v326_v13 = vsel %vm325_vm6, %v1059_v38, %v324_v46  ;;  %v352_v10 = vmul.f32 %v767_v41, %v1069_v56  ;;  %v769_v19 = vpop.eup %768  ;;  %784 = vrsqrt.f32 %v1174_v3 }
  0x5e   :  { %v329_v54 = vsel %vm327_vm7, %v328_v4, %v326_v13  ;;  %v340_v45 = vsel %vm339_vm8, %v1064_v51, %v338_v1  ;;  %v365_v0 = vmul.f32 %v315_v12, %v1053_v32  ;;  %v771_v28 = vpop.eup %770  ;;  %786 = vlog2.f32 %v1111_v63 }
  0x5f   :  { %v343_v48 = vsel %vm341_vm9, %v342_v37, %v340_v45  ;;  %v354_v16 = vsel %vm353_vm10, %v1069_v56, %v352_v10  ;;  %v367_v25 = vmul.f32 %v329_v54, %v1059_v38  ;;  %v773_v30 = vpop.eup %772  ;;  %v1181_v38 = vmul.f32 %v986_v14, %v1107_v20 }
  0x60   :  { %v357_v4 = vsel %vm355_vm11, %v356_v8, %v354_v16  ;;  %v369_v36 = vmul.f32 %v343_v48, %v1064_v51  ;;  %v389_v32 = vmul.f32 %v977_v9, %v365_v0  ;;  %v775_v5 = vpop.eup %774  ;;  %v152_v13 = vmul.f32 0.6931472, %v769_v19 }
  0x61   :  { %v371_v29 = vmul.f32 %v357_v4, %v1069_v56  ;;  %v391_v37 = vmul.f32 %v979_v11, %v367_v25  ;;  %v777_v9 = vpop.eup %776  ;;  %v1194_v11 = vmul.f32 %v995_v18, %v1117_v23  ;;  %v290_v20 = vmul.f32 %v775_v5, %v773_v30 }
  0x62   :  { %v393_v51 = vmul.f32 %v988_v15, %v369_v36  ;;  %v397_v46 = vmul.f32 %v389_v32, %v1114_v21  ;;  %v779_v56 = vpop.eup %778  ;;  %v189_v23 = vmul.f32 -0.5, %v1067_v55  ;;  %v170_v0 = vmul.f32 0.6931472, %v771_v28 }
  0x63   :  { %v395_v14 = vmul.f32 %v1005_v27, %v371_v29  ;;  %v399_v17 = vmul.f32 %v391_v37, %v1123_v31  ;;  %v292_v41 = vmul.f32 %v779_v56, %v777_v9  ;;  %v298_v1 = vsub.f32 1.0, %v290_v20 }
  0x64   :  { %v401_v15 = vmul.f32 %v393_v51, %v241_v22  ;;  %v192_v31 = vand.u32 2147483647, %v1067_v55  ;;  %v781_v18 = vpop.eup %780  ;;  %v207_v22 = vmul.f32 -0.5, %v1078_v58  ;;  %v321_v16 = vand.u32 2147483648, %v1140_v53 }
  0x65   :  { %v403_v2 = vmul.f32 %v395_v14, %v243_v34  ;;  %v547_v59 = vcombine.low %v397_v46, %v399_v17  ;;  %v548_v27 = vcombine.high %v397_v46, %v399_v17  ;;  %v300_v42 = vsub.f32 1.0, %v292_v41  ;;  %v783_v5 = vpop.eup %782 }
  0x66   :  { %v1215_v10 = vmax.f32 %v298_v1, 0.0  ;;  %v317_v54 = vmul.f32 %v781_v18, %v1140_v53  ;;  %v158_v36 = vsel %vm1185_vm12, %v1181_v38, %v152_v13  ;;  %v190_v32 = vadd.f32 1.0, %v189_v23 }
  0x67   :  { %v549_v49 = vcombine.low %v401_v15, %v403_v2  ;;  %v557_v8 = vrot.slane %v547_v59, %v963_v62  ;;  %v550_v24 = vcombine.high %v401_v15, %v403_v2  ;;  %v564_v12 = vrot.slane %v548_v27, %v963_v62  ;;  %v785_v39 = vpop.eup %784 }
  0x68   :  { %v1217_v61 = vmax.f32 %v300_v42, 0.0  ;;  %v319_v48 = vsel %vm318_vm15, %v1140_v53, %v317_v54  ;;  %788 = vrsqrt.f32 %v1215_v10  ;;  %v376_v28 = vmul.f32 0.2, %v974_v6  ;;  %v787_v17 = vpop.eup %786 }
  0x69   :  { %v571_v45 = vrot.slane %v549_v49, %v963_v62  ;;  %v578_v63 = vrot.slane %v550_v24, %v963_v62  ;;  %v210_v6 = vand.u32 2147483647, %v1078_v58  ;;  %v322_v38 = vsel %vm320_vm0, %v321_v16, %v319_v48 }
  0x6a   :  { %790 = vrsqrt.f32 %v1217_v61  ;;  %vm332_vm1 = vcmp.eq.f32.partialorder %v1174_v3, inf  ;;  %v335_v51 = vand.u32 2147483648, %v1174_v3  ;;  %v176_v46 = vsel %vm1204_vm14, %v1194_v11, %v170_v0 }
  0x6b   :  { %v579_v19 = vcombine.low %v557_v8, %v571_v45  ;;  %v580_v25 = vcombine.high %v557_v8, %v571_v45  ;;  %v581_v30 = vcombine.low %v564_v12, %v578_v63  ;;  %v582_v4 = vcombine.high %v564_v12, %v578_v63 }
  0x6c   :  { %v208_v56 = vadd.f32 1.0, %v207_v22  ;;  %v331_v14 = vmul.f32 %v785_v39, %v1174_v3  ;;  %vm334_vm2 = vcmp.eq.f32.partialorder %v1174_v3, 0.0  ;;  %v188_v20 = vmul.f32 0.6931472, %v783_v5 }
  0x6d   :  { %v627_v34 = vsel %vm538_vm13, %v579_v19, 0.0  ;;  %v628_v29 = vsel %vm538_vm13, %v580_v25, 0.0  ;;  %v629_v37 = vsel %vm538_vm13, %v581_v30, 0.0  ;;  %v630_v9 = vsel %vm538_vm13, %v582_v4, 0.0 }
  0x6e   :  { %678 = vst [vmem:[#allocation8] sm:$0xff] %v627_v34  ;;  %679 = vst [vmem:[#allocation8 + $0x8] sm:$0xff] %v628_v29  ;;  %v191_v15 = vmul.f32 %v1067_v55, %v190_v32  ;;  %vm1251_vm3 = vcmp.lt.f32.partialorder %v192_v31, 0.0004427343  ;;  %v234_v41 = vsub.f32 %v218_v40, %v1031_v44  ;;  %v333_v21 = vsel %vm332_vm1, %v1174_v3, %v331_v14 }
  0x6f   :  { %680 = vst [vmem:[#allocation8 + $0x10] sm:$0xff] %v629_v37  ;;  %681 = vst [vmem:[#allocation8 + $0x18] sm:$0xff] %v630_v9  ;;  %v366_v11 = vmul.f32 %v322_v38, %v1140_v53  ;;  %v382_v2 = vadd.f32 0.4, %v1197_v26  ;;  %v384_v59 = vadd.f32 0.4, %v376_v28  ;;  %v238_v55 = vadd.f32 %v1076_v57, %v158_v36 }
  0x70   :  { %vm1261_vm4 = vcmp.lt.f32.partialorder %v210_v6, 0.0004427343  ;;  %v240_v1 = vadd.f32 %v1085_v60, %v176_v46  ;;  %v336_v31 = vsel %vm334_vm2, %v335_v51, %v333_v21  ;;  %v209_v42 = vmul.f32 %v1078_v58, %v208_v56 }
  0x71   :  { %v368_v47 = vmul.f32 %v336_v31, %v1174_v3  ;;  %v378_v40 = vmul.f32 0.2, %v1008_v33  ;;  %v380_v44 = vmul.f32 0.2, %v1042_v7  ;;  %v194_v26 = vsel %vm1251_vm3, %v191_v15, %v188_v20 }
  0x72   :  { %v789_v53 = vpop.eup %788  ;;  %v206_v18 = vmul.f32 0.6931472, %v787_v17  ;;  %vm346_vm5 = vcmp.eq.f32.partialorder %v1215_v10, inf  ;;  %v349_v57 = vand.u32 2147483648, %v1215_v10  ;;  %vm348_vm6 = vcmp.eq.f32.partialorder %v1215_v10, 0.0 }
  0x73   :  { %v345_v60 = vmul.f32 %v789_v53, %v1215_v10  ;;  %v390_v58 = vmul.f32 %v382_v2, %v366_v11  ;;  %v392_v49 = vmul.f32 %v384_v59, %v368_v47  ;;  %v236_v33 = vsub.f32 %v220_v43, %v1057_v35 }
  0x74   :  { %v791_v3 = vpop.eup %790  ;;  %vm360_vm7 = vcmp.eq.f32.partialorder %v1217_v61, inf  ;;  %v363_v7 = vand.u32 2147483648, %v1217_v61  ;;  %vm362_vm8 = vcmp.eq.f32.partialorder %v1217_v61, 0.0  ;;  %v386_v12 = vadd.f32 0.4, %v378_v40 }
  0x75   :  { %v347_v8 = vsel %vm346_vm5, %v1215_v10, %v345_v60  ;;  %v359_v24 = vmul.f32 %v791_v3, %v1217_v61  ;;  %v212_v13 = vsel %vm1261_vm4, %v209_v42, %v206_v18  ;;  %v242_v54 = vadd.f32 %v234_v41, %v194_v26 }
  0x76   :  { %v350_v45 = vsel %vm348_vm6, %v349_v57, %v347_v8  ;;  %v388_v63 = vadd.f32 0.4, %v380_v44  ;;  %v398_v35 = vmul.f32 %v390_v58, %v238_v55  ;;  %v400_v0 = vmul.f32 %v392_v49, %v240_v1 }
  0x77   :  { %v361_v52 = vsel %vm360_vm7, %v1217_v61, %v359_v24  ;;  %v370_v43 = vmul.f32 %v350_v45, %v1215_v10  ;;  %v244_v48 = vadd.f32 %v236_v33, %v212_v13 }
  0x78   :  { %v364_v22 = vsel %vm362_vm8, %v363_v7, %v361_v52  ;;  %v583_v4 = vcombine.low %v398_v35, %v400_v0  ;;  %v584_v36 = vcombine.high %v398_v35, %v400_v0 }
  0x79   :  { %v372_v16 = vmul.f32 %v364_v22, %v1217_v61  ;;  %v394_v19 = vmul.f32 %v386_v12, %v370_v43 }
  0x7a   :  { %v593_v5 = vrot.slane %v583_v4, %v963_v62  ;;  %v600_v29 = vrot.slane %v584_v36, %v963_v62 }
  0x7b   :  { %v396_v25 = vmul.f32 %v388_v63, %v372_v16  ;;  %v402_v30 = vmul.f32 %v394_v19, %v242_v54 }
  0x7d   :  { %v404_v32 = vmul.f32 %v396_v25, %v244_v48 }
  0x7f   :  { %v585_v28 = vcombine.low %v402_v30, %v404_v32  ;;  %v586_v34 = vcombine.high %v402_v30, %v404_v32 }
  0x81   :  { %v607_v10 = vrot.slane %v585_v28, %v963_v62  ;;  %v614_v37 = vrot.slane %v586_v34, %v963_v62 }
  0x83   :  { %v615_v9 = vcombine.low %v593_v5, %v607_v10  ;;  %v616_v61 = vcombine.high %v593_v5, %v607_v10  ;;  %v617_v39 = vcombine.low %v600_v29, %v614_v37  ;;  %v618_v6 = vcombine.high %v600_v29, %v614_v37 }
  0x85   :  { %v631_v38 = vsel %vm538_vm13, %v615_v9, 0.0  ;;  %v632_v51 = vsel %vm538_vm13, %v616_v61, 0.0  ;;  %v633_v46 = vsel %vm538_vm13, %v617_v39, 0.0  ;;  %v634_v56 = vsel %vm538_vm13, %v618_v6, 0.0 }
  0x86   :  { %682 = vst [vmem:[#allocation8 + $0x20] sm:$0xff] %v631_v38  ;;  %683 = vst [vmem:[#allocation8 + $0x28] sm:$0xff] %v632_v51 }
  0x87   :  { %684 = vst [vmem:[#allocation8 + $0x30] sm:$0xff] %v633_v46  ;;  %685 = vst [vmem:[#allocation8 + $0x38] sm:$0xff] %v634_v56 }
  0x88   :  { %847 = shalt.err (!%p844_p6)
}
  0x89   :  { %s848_s12 = scalar_lea.hbm %s1316_s2, 1024 }
  0x8a   :  { %p849_p7 = scmp.ne.s32.totalorder %s1316_s2, %s848_s12  ;;  %p852_p8 = scmp.lt.u32.totalorder %s848_s12, %s1316_s2 }
  0x8c   :  { %p854_p9 = pnand %p852_p8, %p849_p7 }
  0x8e   :  { %857 = shalt.err (!%p854_p9)
}
  0x8f   :  { %695 = dma.vmem_to_hbm [thread:$0]  %s693_s8, 1024, %s1316_s2, [#allocation5]  }
  0x90   :  { %862 = dma.done.wait [#allocation5], 1024  }
  0x91   :  { %863 = vsyncadd [#allocation5], 4294966272 }
  0x92   :  { %699 = vsyncpa [#allocation4], 1 }
  0x93   :  { %700 = vsyncpa [#allocation7], 1 }
  0x94   :  { %701 = vsyncpa [#allocation5], 1 }

</bundles_post_ra>
